<compile_context>
chip_gen: v6e
topology: v6e:2x2x1
jax: 0.10.0
libtpu: 0.0.40
codegen_flags: <defaults>
</compile_context>

<pallas_src>
import math
import functools

import jax
import jax.numpy as jnp
from jax import lax
from jax.experimental import pallas as pl
from jax.experimental.pallas import tpu as pltpu

_NEG_INF = -1e30                       # large finite negative (avoids inf-inf)


# ---------------------------------------------------------------------------
# ALiBi slopes (identical to the PyTorch helper)
# ---------------------------------------------------------------------------
def get_alibi_slopes(n: int) -> list:
    def get_slopes_power_of_2(n):
        start = 2 ** (-(2 ** (-(math.log2(n) - 3))))
        ratio = start
        return [start * ratio ** i for i in range(n)]

    if math.log2(n).is_integer():
        return get_slopes_power_of_2(n)
    closest = 2 ** math.floor(math.log2(n))
    return (get_slopes_power_of_2(closest)
            + get_alibi_slopes(2 * closest)[0::2][: n - closest])


# ---------------------------------------------------------------------------
# generation-aware VMEM budget & tiling helpers
# ---------------------------------------------------------------------------
def _vmem_limit_bytes():
    """~75% of physical VMEM, capped at 100 MiB (v7x -> 48 MiB, v5e/v6e -> 96 MiB)."""
    try:
        cap = int(pltpu.get_tpu_info().vmem_capacity_bytes)
    except Exception:
        return 48 * 1024 * 1024          # conservative: safe on every generation
    return max(32 * 1024 * 1024, min(cap * 3 // 4, 100 * 1024 * 1024))


def _pick_tile(dim, pref, align):
    """Largest tile <= pref that divides `dim`, preferring multiples of align."""
    if dim <= pref:
        return dim
    t = (pref // align) * align
    while t >= align:
        if dim % t == 0:
            return t
        t -= align
    best = 1
    for t in range(min(pref, dim), 0, -1):
        if dim % t == 0:
            best = t
            break
    return best if best >= align else dim


# ---------------------------------------------------------------------------
# plain tiled linear:  y(M,N) = x(M,K) @ W(K,N) + b(1,N)
# (used for both in_proj and out_proj; K=D fully fills the MXU, output is
#  lane-dense since N = 3D / D)
# ---------------------------------------------------------------------------
def _linear_kernel(x_ref, w_ref, b_ref, o_ref, acc_ref, *, mxu_dtype):
    kk = pl.program_id(2)

    @pl.when(kk == 0)
    def _init():
        acc_ref[...] = jnp.zeros_like(acc_ref)

    x = x_ref[...]
    w = w_ref[...]
    if mxu_dtype is not None:                    # feed the MXU bf16, accum f32
        x = x.astype(mxu_dtype)
        w = w.astype(mxu_dtype)
    acc_ref[...] += jnp.dot(x, w, preferred_element_type=jnp.float32)

    @pl.when(kk == pl.num_programs(2) - 1)
    def _finalize():
        o_ref[...] = (acc_ref[...] + b_ref[...].astype(jnp.float32)
                      ).astype(o_ref.dtype)


def linear_projection(x2d, w, b2d, *, block_m=None, block_n=512, block_k=512,
                      mxu_dtype=jnp.bfloat16):
    M, K = x2d.shape
    Kw, N = w.shape
    assert Kw == K
    vmem_limit = _vmem_limit_bytes()
    if block_m is None:
        # larger M tiles cut weight re-streaming (big win on v5e's slow HBM);
        # keep smaller tiles where VMEM is 64 MiB (v7x).
        block_m = 1024 if vmem_limit >= 80 * 1024 * 1024 else 512
    tm = _pick_tile(M, block_m, 8)
    tn = _pick_tile(N, block_n, 128)
    tk = _pick_tile(K, block_k, 128)
    grid = (M // tm, N // tn, K // tk)

    cost = pl.CostEstimate(
        flops=int(2 * M * N * K),
        transcendentals=0,
        bytes_accessed=int((x2d.size * (N // tn) + w.size * (M // tm) + M * N)
                           * x2d.dtype.itemsize))

    return pl.pallas_call(
        functools.partial(_linear_kernel, mxu_dtype=mxu_dtype),
        grid=grid,
        in_specs=[
            pl.BlockSpec((tm, tk), lambda i, j, kk: (i, kk)),
            pl.BlockSpec((tk, tn), lambda i, j, kk: (kk, j)),
            pl.BlockSpec((1, tn), lambda i, j, kk: (0, j)),
        ],
        out_specs=pl.BlockSpec((tm, tn), lambda i, j, kk: (i, j)),
        out_shape=jax.ShapeDtypeStruct((M, N), x2d.dtype),
        scratch_shapes=[pltpu.VMEM((tm, tn), jnp.float32)],
        compiler_params=pltpu.CompilerParams(
            dimension_semantics=("parallel", "parallel", "arbitrary"),
            vmem_limit_bytes=vmem_limit),
        cost_estimate=cost,
    )(x2d, w, b2d)


# ---------------------------------------------------------------------------
# flash attention with ALiBi bias + causal mask (online softmax)
# grid = (B, H, num_q); the causal KV loop runs INSIDE the kernel with a
# qi-dependent trip count, so there are no skipped grid steps.
# ---------------------------------------------------------------------------
def _flash_attn_kernel(slopes_ref, q_ref, k_ref, v_ref, o_ref,
                       m_ref, l_ref, acc_ref, *, block_q, block_k, mxu_dtype):
    h = pl.program_id(1)
    qi = pl.program_id(2)

    # per-(b, h, q-tile) invocation: (re)initialise online-softmax state
    m_ref[...] = jnp.full_like(m_ref, _NEG_INF)
    l_ref[...] = jnp.zeros_like(l_ref)
    acc_ref[...] = jnp.zeros_like(acc_ref)

    q = q_ref[...].astype(mxu_dtype)              # 1/sqrt(Hd) folded into W_in
    slope = slopes_ref[h]                         # SMEM scalar read

    # loop-invariant ALiBi pieces:  col - row = rel0 + (ki - qi) * block_k
    shape = (block_q, block_k)
    rel0 = (lax.broadcasted_iota(jnp.int32, shape, 1)
            - lax.broadcasted_iota(jnp.int32, shape, 0))
    bias_base = slope * rel0.astype(jnp.float32)
    diag_bias = jnp.where(rel0 <= 0, bias_base, _NEG_INF)   # diagonal tile only
    # TODO(synk): optionally compute p/alpha exp in bf16 on v6e/v7x (not v5e).

    def _attend(ki, bias):
        start = pl.multiple_of(ki * block_k, block_k)
        k = k_ref[pl.ds(start, block_k), :].astype(mxu_dtype)
        v = v_ref[pl.ds(start, block_k), :].astype(mxu_dtype)
        # contract last dims (q @ k^T), bf16 on the MXU with f32 accumulation
        s = lax.dot_general(q, k, (((1,), (1,)), ((), ())),
                            preferred_element_type=jnp.float32)   # (tq, tk)
        s = s + bias
        m_prev = m_ref[...]
        m_new = jnp.maximum(m_prev, jnp.max(s, axis=-1, keepdims=True))
        alpha = jnp.exp(m_prev - m_new)
        p = jnp.exp(s - m_new)
        l_ref[...] = alpha * l_ref[...] + jnp.sum(p, axis=-1, keepdims=True)
        acc_ref[...] = alpha * acc_ref[...] + jnp.dot(
            p.astype(mxu_dtype), v, preferred_element_type=jnp.float32)
        m_ref[...] = m_new

    def _interior(ki, carry):
        # tiles fully below the diagonal: ALiBi bias only, no compare/select
        off = slope * ((ki - qi) * block_k).astype(jnp.float32)
        _attend(ki, bias_base + off)
        return carry

    lax.fori_loop(0, qi, _interior, 0)    # fully-unmasked kv tiles
    _attend(qi, diag_bias)                # the diagonal (masked) kv tile

    # finalize: exact divide, executed once per (b, h, q-tile)
    o_ref[...] = (acc_ref[...] / l_ref[...]).astype(o_ref.dtype)


def alibi_flash_attention(q, k, v, slopes, *, block=512, mxu_dtype=jnp.bfloat16):
    # q, k, v: (B, H, L, Hd); slopes: (H,)
    B, H, L, Hd = q.shape
    t = _pick_tile(L, block, 8)
    num_q = L // t
    vmem_limit = _vmem_limit_bytes()
    # TODO(synk): for very long L the full per-(b,h) K/V block must fit VMEM;
    # switch K/V to a pltpu.emit_pipeline over kv chunks in that regime.

    def q_map(b, h, qi, slopes_ref):
        return (b, h, qi, 0)

    def kv_map(b, h, qi, slopes_ref):
        # K/V for this (b, h) stay resident; block index is constant across
        # q tiles so Pallas only re-DMAs them when (b, h) changes.
        return (b, h, 0, 0)

    kernel = functools.partial(_flash_attn_kernel, block_q=t, block_k=t,
                               mxu_dtype=mxu_dtype)

    itemsize = q.dtype.itemsize
    cost = pl.CostEstimate(
        flops=int(2 * B * H * L * L * Hd),            # ~causal half of 4*B*H*L*L*Hd
        transcendentals=int(B * H * L * L // 2),
        bytes_accessed=int(4 * B * H * L * Hd * itemsize))

    return pl.pallas_call(
        kernel,
        grid_spec=pltpu.PrefetchScalarGridSpec(
            num_scalar_prefetch=1,
            grid=(B, H, num_q),
            in_specs=[
                pl.BlockSpec((None, None, t, Hd), q_map),
                pl.BlockSpec((None, None, L, Hd), kv_map),
                pl.BlockSpec((None, None, L, Hd), kv_map),
            ],
            out_specs=pl.BlockSpec((None, None, t, Hd), q_map),
            scratch_shapes=[
                pltpu.VMEM((t, 1), jnp.float32),     # running max m
                pltpu.VMEM((t, 1), jnp.float32),     # running sum l
                pltpu.VMEM((t, Hd), jnp.float32),    # output accumulator
            ]),
        out_shape=jax.ShapeDtypeStruct((B, H, L, Hd), q.dtype),
        compiler_params=pltpu.CompilerParams(
            dimension_semantics=("parallel", "parallel", "arbitrary"),
            vmem_limit_bytes=vmem_limit),
        cost_estimate=cost,
    )(slopes.astype(jnp.float32), q, k, v)


# ---------------------------------------------------------------------------
# Module forward (no kv-cache branch, normalize_qk=False, dropout=0 / eval)
# ---------------------------------------------------------------------------
def flash_alibi_causal_self_attention(x, params, num_heads,
                                       mxu_dtype=jnp.bfloat16):
    B, L, D = x.shape
    H = num_heads
    Hd = D // H

    # Fold 1/sqrt(Hd) into the Q slice of the in_proj weight/bias (tiny O(D*3D)
    # op; removes a per-kv-step VPU rescale of q inside the attention kernel).
    w_in, b_in = params["w_in"], params["b_in"]
    col_scale = jnp.concatenate(
        [jnp.full((D,), 1.0 / math.sqrt(Hd), dtype=w_in.dtype),
         jnp.ones((2 * D,), dtype=w_in.dtype)])
    w_in = w_in * col_scale[None, :]
    b_in = b_in * col_scale

    # in_proj: single MXU-dense matmul (K=D, N=3D, lane-dense output store)
    qkv = linear_projection(x.reshape(B * L, D), w_in, b_in.reshape(1, 3 * D),
                            mxu_dtype=mxu_dtype)                   # (B*L, 3D)

    # head split: one XLA relayout (pure HBM bandwidth) keeps the kernels dense
    qkv = qkv.reshape(B, L, 3, H, Hd)
    q = jnp.transpose(qkv[:, :, 0], (0, 2, 1, 3))                  # (B,H,L,Hd)
    k = jnp.transpose(qkv[:, :, 1], (0, 2, 1, 3))
    v = jnp.transpose(qkv[:, :, 2], (0, 2, 1, 3))

    # flash attention with ALiBi + causal mask
    attn = alibi_flash_attention(q, k, v, params["alibi_slopes"],
                                 mxu_dtype=mxu_dtype)              # (B,H,L,Hd)

    # head merge: one XLA relayout, then out_proj with full MXU K fill (K=D)
    attn2d = jnp.transpose(attn, (0, 2, 1, 3)).reshape(B * L, D)
    out = linear_projection(attn2d, params["w_out"],
                            params["b_out"].reshape(1, D), mxu_dtype=mxu_dtype)
    return out.reshape(B, L, D)
    # TODO(synk): kv-cache decode branch (flash_attn_with_kvcache) and the
    # normalize_qk LayerNorm path are not implemented (module defaults).


# ---------------------------------------------------------------------------
# Pure-JAX f32 reference (for correctness check)
# ---------------------------------------------------------------------------
def reference_forward(x, params, num_heads):
    B, L, D = x.shape
    Hd = D // num_heads
    qkv = x @ params["w_in"] + params["b_in"]
    qkv = qkv.reshape(B, L, 3, num_heads, Hd)
    q = jnp.transpose(qkv[:, :, 0], (0, 2, 1, 3))
    k = jnp.transpose(qkv[:, :, 1], (0, 2, 1, 3))
    v = jnp.transpose(qkv[:, :, 2], (0, 2, 1, 3))
    s = jnp.einsum("bhid,bhjd->bhij", q, k) / math.sqrt(Hd)
    i = jnp.arange(L)[:, None]
    j = jnp.arange(L)[None, :]
    bias = params["alibi_slopes"][None, :, None, None] * (j - i).astype(jnp.float32)
    s = s + bias
    s = jnp.where((j <= i)[None, None], s, -jnp.inf)
    p = jax.nn.softmax(s, axis=-1)
    out = jnp.einsum("bhij,bhjd->bhid", p, v)
    out = jnp.transpose(out, (0, 2, 1, 3)).reshape(B, L, D)
    return out @ params["w_out"] + params["b_out"]


# ---------------------------------------------------------------------------
if __name__ == "__main__":
    B, L, D, H = 2, 16, 32, 4

    key = jax.random.PRNGKey(0)
    k_x, k_w1, k_b1, k_w2, k_b2 = jax.random.split(key, 5)

    bound_in = 1.0 / math.sqrt(D)
    params = {
        "w_in": jax.random.uniform(k_w1, (D, 3 * D), jnp.float32,
                                   -bound_in, bound_in),
        "b_in": jax.random.uniform(k_b1, (3 * D,), jnp.float32,
                                   -bound_in, bound_in),
        "w_out": jax.random.uniform(k_w2, (D, D), jnp.float32,
                                    -bound_in, bound_in),
        "b_out": jax.random.uniform(k_b2, (D,), jnp.float32,
                                    -bound_in, bound_in),
        "alibi_slopes": jnp.asarray(get_alibi_slopes(H), dtype=jnp.float32),
    }

    x = jax.random.normal(k_x, (B, L, D), jnp.float32)

    fwd = jax.jit(flash_alibi_causal_self_attention,
                  static_argnames=("num_heads", "mxu_dtype"))
    out = fwd(x, params, num_heads=H)
    out = jax.block_until_ready(out)

    ref = reference_forward(x, params, H)
    assert out.shape == (B, L, D)
    # tolerance accounts for bf16 MXU inputs (f32 accumulation) vs f32 reference
    # -- matching the half-precision behaviour of the original flash_attn op.
    assert jnp.allclose(out, ref, atol=2e-2, rtol=2e-2), "mismatch vs reference"
    assert bool(jnp.all(jnp.isfinite(out)))

    print("KERNEL_OK")
</pallas_src>

<mosaic_0001>
module attributes {stable_mosaic.version = 11 : i64} {
  func.func @_linear_kernel(%arg0: i32, %arg1: i32, %arg2: i32, %arg3: memref<32x32xf32, #tpu.memory_space<vmem>>, %arg4: memref<32x96xf32, #tpu.memory_space<vmem>>, %arg5: memref<1x96xf32, #tpu.memory_space<vmem>>, %arg6: memref<32x96xf32, #tpu.memory_space<vmem>>, %arg7: memref<32x96xf32, #tpu.memory_space<vmem>>) attributes {dimension_semantics = [#tpu.dimension_semantics<parallel>, #tpu.dimension_semantics<parallel>, #tpu.dimension_semantics<arbitrary>], iteration_bounds = array<i64: 1, 1, 1>, scalar_prefetch = 0 : i64, scratch_operands = 1 : i64, tpu.core_type = #tpu.core_type<tc>, window_params = [{transform_indices = @transform_0, window_bounds = array<i64: 32, 32>}, {transform_indices = @transform_1, window_bounds = array<i64: 32, 96>}, {transform_indices = @transform_2, window_bounds = array<i64: 1, 96>}, {transform_indices = @transform_3, window_bounds = array<i64: 32, 96>}]} {
    %c0_i32 = arith.constant 0 : i32
    %0 = arith.cmpi eq, %arg2, %c0_i32 : i32
    %1 = arith.extui %0 : i1 to i32
    %c0_i32_0 = arith.constant 0 : i32
    %2 = arith.cmpi ne, %1, %c0_i32_0 : i32
    scf.if %2 {
      %cst_10 = arith.constant 0.000000e+00 : f32
      %14 = vector.broadcast %cst_10 : f32 to vector<32x96xf32>
      %c0_11 = arith.constant 0 : index
      %c0_12 = arith.constant 0 : index
      %15 = vector.load %arg7[%c0_11, %c0_12] : memref<32x96xf32, #tpu.memory_space<vmem>>, vector<32x96xf32>
      tpu.vector_store %arg7[%c0_11, %c0_12], %14 {strides = array<i32>} : memref<32x96xf32, #tpu.memory_space<vmem>>, vector<32x96xf32>,
    } else {
    }
    %c0 = arith.constant 0 : index
    %c0_1 = arith.constant 0 : index
    %3 = vector.load %arg3[%c0, %c0_1] : memref<32x32xf32, #tpu.memory_space<vmem>>, vector<32x32xf32>
    %c0_2 = arith.constant 0 : index
    %c0_3 = arith.constant 0 : index
    %4 = vector.load %arg4[%c0_2, %c0_3] : memref<32x96xf32, #tpu.memory_space<vmem>>, vector<32x96xf32>
    %5 = arith.truncf %3 : vector<32x32xf32> to vector<32x32xbf16>
    %6 = arith.truncf %4 : vector<32x96xf32> to vector<32x96xbf16>
    %c0_4 = arith.constant 0 : index
    %c0_5 = arith.constant 0 : index
    %7 = vector.load %arg7[%c0_4, %c0_5] : memref<32x96xf32, #tpu.memory_space<vmem>>, vector<32x96xf32>
    %cst = arith.constant dense<0.000000e+00> : vector<32x96xf32>
    %8 = tpu.matmul %5, %6, %cst {dimension_numbers = #tpu.dot_dimension_numbers<[1], [0], [0], [1], [0, 0, 1, 1], [], []>} : vector<32x32xbf16>, vector<32x96xbf16>, vector<32x96xf32> -> vector<32x96xf32>
    %9 = arith.addf %7, %8 : vector<32x96xf32>
    %c0_6 = arith.constant 0 : index
    %c0_7 = arith.constant 0 : index
    %10 = vector.load %arg7[%c0_6, %c0_7] : memref<32x96xf32, #tpu.memory_space<vmem>>, vector<32x96xf32>
    tpu.vector_store %arg7[%c0_6, %c0_7], %9 {strides = array<i32>} : memref<32x96xf32, #tpu.memory_space<vmem>>, vector<32x96xf32>,
    %c0_i32_8 = arith.constant 0 : i32
    %11 = arith.cmpi eq, %arg2, %c0_i32_8 : i32
    %12 = arith.extui %11 : i1 to i32
    %c0_i32_9 = arith.constant 0 : i32
    %13 = arith.cmpi ne, %12, %c0_i32_9 : i32
    scf.if %13 {
      %c0_10 = arith.constant 0 : index
      %c0_11 = arith.constant 0 : index
      %14 = vector.load %arg7[%c0_10, %c0_11] : memref<32x96xf32, #tpu.memory_space<vmem>>, vector<32x96xf32>
      %c0_12 = arith.constant 0 : index
      %c0_13 = arith.constant 0 : index
      %15 = vector.load %arg5[%c0_12, %c0_13] : memref<1x96xf32, #tpu.memory_space<vmem>>, vector<1x96xf32>
      %16 = vector.broadcast %15 : vector<1x96xf32> to vector<32x96xf32>
      %17 = arith.addf %14, %16 : vector<32x96xf32>
      %c0_14 = arith.constant 0 : index
      %c0_15 = arith.constant 0 : index
      %18 = vector.load %arg6[%c0_14, %c0_15] : memref<32x96xf32, #tpu.memory_space<vmem>>, vector<32x96xf32>
      tpu.vector_store %arg6[%c0_14, %c0_15], %17 {strides = array<i32>} : memref<32x96xf32, #tpu.memory_space<vmem>>, vector<32x96xf32>,
    } else {
    }
    return
  }
  func.func @transform_0(%arg0: i32, %arg1: i32, %arg2: i32) -> (i32, i32) {
    %c0_i32 = arith.constant 0 : i32
    return %arg0, %arg2 : i32, i32
  }
  func.func @transform_1(%arg0: i32, %arg1: i32, %arg2: i32) -> (i32, i32) {
    %c0_i32 = arith.constant 0 : i32
    return %arg2, %arg1 : i32, i32
  }
  func.func @transform_2(%arg0: i32, %arg1: i32, %arg2: i32) -> (i32, i32) {
    %c0_i32 = arith.constant 0 : i32
    %c0_i32_0 = arith.constant 0 : i32
    return %c0_i32, %arg1 : i32, i32
  }
  func.func @transform_3(%arg0: i32, %arg1: i32, %arg2: i32) -> (i32, i32) {
    %c0_i32 = arith.constant 0 : i32
    return %arg0, %arg1 : i32, i32
  }
}

module attributes {stable_mosaic.version = 11 : i64} {
  func.func @_flash_attn_kernel(%arg0: i32, %arg1: i32, %arg2: i32, %arg3: memref<4xf32, #tpu.memory_space<smem>>, %arg4: memref<1x1x16x8xf32, #tpu.memory_space<vmem>>, %arg5: memref<1x1x16x8xf32, #tpu.memory_space<vmem>>, %arg6: memref<1x1x16x8xf32, #tpu.memory_space<vmem>>, %arg7: memref<1x1x16x8xf32, #tpu.memory_space<vmem>>, %arg8: memref<16x1xf32, #tpu.memory_space<vmem>>, %arg9: memref<16x1xf32, #tpu.memory_space<vmem>>, %arg10: memref<16x8xf32, #tpu.memory_space<vmem>>) attributes {dimension_semantics = [#tpu.dimension_semantics<parallel>, #tpu.dimension_semantics<parallel>, #tpu.dimension_semantics<arbitrary>], iteration_bounds = array<i64: 2, 4, 1>, scalar_prefetch = 1 : i64, scratch_operands = 3 : i64, tpu.core_type = #tpu.core_type<tc>, window_params = [{transform_indices = @transform_0, window_bounds = array<i64: 1, 1, 16, 8>}, {transform_indices = @transform_1, window_bounds = array<i64: 1, 1, 16, 8>}, {transform_indices = @transform_2, window_bounds = array<i64: 1, 1, 16, 8>}, {transform_indices = @transform_3, window_bounds = array<i64: 1, 1, 16, 8>}]} {
    %cst = arith.constant -1.000000e+30 : f32
    %0 = vector.broadcast %cst : f32 to vector<16x1xf32>
    %c0 = arith.constant 0 : index
    %c0_0 = arith.constant 0 : index
    %1 = vector.load %arg8[%c0, %c0_0] : memref<16x1xf32, #tpu.memory_space<vmem>>, vector<16x1xf32>
    tpu.vector_store %arg8[%c0, %c0_0], %0 {strides = array<i32>} : memref<16x1xf32, #tpu.memory_space<vmem>>, vector<16x1xf32>,
    %cst_1 = arith.constant 0.000000e+00 : f32
    %2 = vector.broadcast %cst_1 : f32 to vector<16x1xf32>
    %c0_2 = arith.constant 0 : index
    %c0_3 = arith.constant 0 : index
    %3 = vector.load %arg9[%c0_2, %c0_3] : memref<16x1xf32, #tpu.memory_space<vmem>>, vector<16x1xf32>
    tpu.vector_store %arg9[%c0_2, %c0_3], %2 {strides = array<i32>} : memref<16x1xf32, #tpu.memory_space<vmem>>, vector<16x1xf32>,
    %cst_4 = arith.constant 0.000000e+00 : f32
    %4 = vector.broadcast %cst_4 : f32 to vector<16x8xf32>
    %c0_5 = arith.constant 0 : index
    %c0_6 = arith.constant 0 : index
    %5 = vector.load %arg10[%c0_5, %c0_6] : memref<16x8xf32, #tpu.memory_space<vmem>>, vector<16x8xf32>
    tpu.vector_store %arg10[%c0_5, %c0_6], %4 {strides = array<i32>} : memref<16x8xf32, #tpu.memory_space<vmem>>, vector<16x8xf32>,
    %c0_7 = arith.constant 0 : index
    %c0_8 = arith.constant 0 : index
    %c0_9 = arith.constant 0 : index
    %c0_10 = arith.constant 0 : index
    %6 = vector.load %arg4[%c0_7, %c0_8, %c0_9, %c0_10] : memref<1x1x16x8xf32, #tpu.memory_space<vmem>>, vector<1x1x16x8xf32>
    %7 = vector.shape_cast %6 : vector<1x1x16x8xf32> to vector<16x8xf32>
    %8 = arith.truncf %7 : vector<16x8xf32> to vector<16x8xbf16>
    %9 = arith.index_cast %arg1 : i32 to index
    %10 = memref.load %arg3[%9] : memref<4xf32, #tpu.memory_space<smem>>
    %11 = tpu.iota {dimensions = array<i32: 1>} : vector<16x16xi32>
    %12 = tpu.iota {dimensions = array<i32: 0>} : vector<16x16xi32>
    %13 = arith.subi %11, %12 : vector<16x16xi32>
    %14 = arith.sitofp %13 : vector<16x16xi32> to vector<16x16xf32>
    %15 = vector.broadcast %10 : f32 to vector<16x16xf32>
    %16 = arith.mulf %15, %14 : vector<16x16xf32>
    %c0_i32 = arith.constant 0 : i32
    %17 = vector.broadcast %c0_i32 : i32 to vector<16x16xi32>
    %18 = arith.cmpi sle, %13, %17 : vector<16x16xi32>
    %cst_11 = arith.constant -1.000000e+30 : f32
    %19 = vector.broadcast %cst_11 : f32 to vector<16x16xf32>
    %20 = arith.select %18, %16, %19 : vector<16x16xi1>, vector<16x16xf32>
    %c0_i32_12 = arith.constant 0 : i32
    %c0_i32_13 = arith.constant 0 : i32
    %21 = arith.subi %arg2, %c0_i32_13 : i32
    %22 = arith.addi %c0_i32_13, %21 : i32
    %c1_i32 = arith.constant 1 : i32
    scf.for %arg11 = %c0_i32_13 to %22 step %c1_i32  : i32 {
      %65 = arith.subi %arg11, %arg2 : i32
      %c16_i32_44 = arith.constant 16 : i32
      %66 = arith.muli %65, %c16_i32_44 : i32
      %67 = arith.sitofp %66 : i32 to f32
      %68 = arith.mulf %10, %67 : f32
      %69 = vector.broadcast %68 : f32 to vector<16x16xf32>
      %70 = arith.addf %16, %69 : vector<16x16xf32>
      %c16_i32_45 = arith.constant 16 : i32
      %71 = arith.muli %arg11, %c16_i32_45 : i32
      %72 = tpu.assume_multiple %71, 16 : i32
      %c0_46 = arith.constant 0 : index
      %c0_47 = arith.constant 0 : index
      %73 = arith.index_cast %72 : i32 to index
      %c0_48 = arith.constant 0 : index
      %74 = vector.load %arg5[%c0_46, %c0_47, %73, %c0_48] : memref<1x1x16x8xf32, #tpu.memory_space<vmem>>, vector<1x1x16x8xf32>
      %75 = vector.shape_cast %74 : vector<1x1x16x8xf32> to vector<16x8xf32>
      %76 = arith.truncf %75 : vector<16x8xf32> to vector<16x8xbf16>
      %c0_49 = arith.constant 0 : index
      %c0_50 = arith.constant 0 : index
      %77 = arith.index_cast %72 : i32 to index
      %c0_51 = arith.constant 0 : index
      %78 = vector.load %arg6[%c0_49, %c0_50, %77, %c0_51] : memref<1x1x16x8xf32, #tpu.memory_space<vmem>>, vector<1x1x16x8xf32>
      %79 = vector.shape_cast %78 : vector<1x1x16x8xf32> to vector<16x8xf32>
      %80 = arith.truncf %79 : vector<16x8xf32> to vector<16x8xbf16>
      %cst_52 = arith.constant dense<0.000000e+00> : vector<16x16xf32>
      %81 = tpu.matmul %8, %76, %cst_52 {dimension_numbers = #tpu.dot_dimension_numbers<[1], [1], [0], [0], [0, 0, 1, 0], [], []>} : vector<16x8xbf16>, vector<16x8xbf16>, vector<16x16xf32> -> vector<16x16xf32>
      %82 = arith.addf %81, %70 : vector<16x16xf32>
      %c0_53 = arith.constant 0 : index
      %c0_54 = arith.constant 0 : index
      %83 = vector.load %arg8[%c0_53, %c0_54] : memref<16x1xf32, #tpu.memory_space<vmem>>, vector<16x1xf32>
      %cst_55 = arith.constant dense<0xFF800000> : vector<16xf32>
      %84 = vector.multi_reduction <maximumf>, %82, %cst_55 [1] : vector<16x16xf32> to vector<16xf32>
      %85 = vector.shape_cast %84 : vector<16xf32> to vector<16x1xf32>
      %86 = arith.maximumf %83, %85 : vector<16x1xf32>
      %87 = arith.subf %83, %86 : vector<16x1xf32>
      %88 = math.exp %87 : vector<16x1xf32>
      %89 = vector.broadcast %86 : vector<16x1xf32> to vector<16x16xf32>
      %90 = arith.subf %82, %89 : vector<16x16xf32>
      %91 = math.exp %90 : vector<16x16xf32>
      %c0_56 = arith.constant 0 : index
      %c0_57 = arith.constant 0 : index
      %92 = vector.load %arg9[%c0_56, %c0_57] : memref<16x1xf32, #tpu.memory_space<vmem>>, vector<16x1xf32>
      %93 = arith.mulf %88, %92 : vector<16x1xf32>
      %cst_58 = arith.constant dense<0.000000e+00> : vector<16xf32>
      %94 = vector.multi_reduction <add>, %91, %cst_58 [1] : vector<16x16xf32> to vector<16xf32>
      %95 = vector.shape_cast %94 : vector<16xf32> to vector<16x1xf32>
      %96 = arith.addf %93, %95 : vector<16x1xf32>
      %c0_59 = arith.constant 0 : index
      %c0_60 = arith.constant 0 : index
      %97 = vector.load %arg9[%c0_59, %c0_60] : memref<16x1xf32, #tpu.memory_space<vmem>>, vector<16x1xf32>
      tpu.vector_store %arg9[%c0_59, %c0_60], %96 {strides = array<i32>} : memref<16x1xf32, #tpu.memory_space<vmem>>, vector<16x1xf32>,
      %c0_61 = arith.constant 0 : index
      %c0_62 = arith.constant 0 : index
      %98 = vector.load %arg10[%c0_61, %c0_62] : memref<16x8xf32, #tpu.memory_space<vmem>>, vector<16x8xf32>
      %99 = vector.broadcast %88 : vector<16x1xf32> to vector<16x8xf32>
      %100 = arith.mulf %99, %98 : vector<16x8xf32>
      %101 = arith.truncf %91 : vector<16x16xf32> to vector<16x16xbf16>
      %cst_63 = arith.constant dense<0.000000e+00> : vector<16x8xf32>
      %102 = tpu.matmul %101, %80, %cst_63 {dimension_numbers = #tpu.dot_dimension_numbers<[1], [0], [0], [1], [0, 0, 1, 1], [], []>} : vector<16x16xbf16>, vector<16x8xbf16>, vector<16x8xf32> -> vector<16x8xf32>
      %103 = arith.addf %100, %102 : vector<16x8xf32>
      %c0_64 = arith.constant 0 : index
      %c0_65 = arith.constant 0 : index
      %104 = vector.load %arg10[%c0_64, %c0_65] : memref<16x8xf32, #tpu.memory_space<vmem>>, vector<16x8xf32>
      tpu.vector_store %arg10[%c0_64, %c0_65], %103 {strides = array<i32>} : memref<16x8xf32, #tpu.memory_space<vmem>>, vector<16x8xf32>,
      %c0_66 = arith.constant 0 : index
      %c0_67 = arith.constant 0 : index
      %105 = vector.load %arg8[%c0_66, %c0_67] : memref<16x1xf32, #tpu.memory_space<vmem>>, vector<16x1xf32>
      tpu.vector_store %arg8[%c0_66, %c0_67], %86 {strides = array<i32>} : memref<16x1xf32, #tpu.memory_space<vmem>>, vector<16x1xf32>,
    }
    %c16_i32 = arith.constant 16 : i32
    %23 = arith.muli %arg2, %c16_i32 : i32
    %24 = tpu.assume_multiple %23, 16 : i32
    %c0_14 = arith.constant 0 : index
    %c0_15 = arith.constant 0 : index
    %25 = arith.index_cast %24 : i32 to index
    %c0_16 = arith.constant 0 : index
    %26 = vector.load %arg5[%c0_14, %c0_15, %25, %c0_16] : memref<1x1x16x8xf32, #tpu.memory_space<vmem>>, vector<1x1x16x8xf32>
    %27 = vector.shape_cast %26 : vector<1x1x16x8xf32> to vector<16x8xf32>
    %28 = arith.truncf %27 : vector<16x8xf32> to vector<16x8xbf16>
    %c0_17 = arith.constant 0 : index
    %c0_18 = arith.constant 0 : index
    %29 = arith.index_cast %24 : i32 to index
    %c0_19 = arith.constant 0 : index
    %30 = vector.load %arg6[%c0_17, %c0_18, %29, %c0_19] : memref<1x1x16x8xf32, #tpu.memory_space<vmem>>, vector<1x1x16x8xf32>
    %31 = vector.shape_cast %30 : vector<1x1x16x8xf32> to vector<16x8xf32>
    %32 = arith.truncf %31 : vector<16x8xf32> to vector<16x8xbf16>
    %cst_20 = arith.constant dense<0.000000e+00> : vector<16x16xf32>
    %33 = tpu.matmul %8, %28, %cst_20 {dimension_numbers = #tpu.dot_dimension_numbers<[1], [1], [0], [0], [0, 0, 1, 0], [], []>} : vector<16x8xbf16>, vector<16x8xbf16>, vector<16x16xf32> -> vector<16x16xf32>
    %34 = arith.addf %33, %20 : vector<16x16xf32>
    %c0_21 = arith.constant 0 : index
    %c0_22 = arith.constant 0 : index
    %35 = vector.load %arg8[%c0_21, %c0_22] : memref<16x1xf32, #tpu.memory_space<vmem>>, vector<16x1xf32>
    %cst_23 = arith.constant dense<0xFF800000> : vector<16xf32>
    %36 = vector.multi_reduction <maximumf>, %34, %cst_23 [1] : vector<16x16xf32> to vector<16xf32>
    %37 = vector.shape_cast %36 : vector<16xf32> to vector<16x1xf32>
    %38 = arith.maximumf %35, %37 : vector<16x1xf32>
    %39 = arith.subf %35, %38 : vector<16x1xf32>
    %40 = math.exp %39 : vector<16x1xf32>
    %41 = vector.broadcast %38 : vector<16x1xf32> to vector<16x16xf32>
    %42 = arith.subf %34, %41 : vector<16x16xf32>
    %43 = math.exp %42 : vector<16x16xf32>
    %c0_24 = arith.constant 0 : index
    %c0_25 = arith.constant 0 : index
    %44 = vector.load %arg9[%c0_24, %c0_25] : memref<16x1xf32, #tpu.memory_space<vmem>>, vector<16x1xf32>
    %45 = arith.mulf %40, %44 : vector<16x1xf32>
    %cst_26 = arith.constant dense<0.000000e+00> : vector<16xf32>
    %46 = vector.multi_reduction <add>, %43, %cst_26 [1] : vector<16x16xf32> to vector<16xf32>
    %47 = vector.shape_cast %46 : vector<16xf32> to vector<16x1xf32>
    %48 = arith.addf %45, %47 : vector<16x1xf32>
    %c0_27 = arith.constant 0 : index
    %c0_28 = arith.constant 0 : index
    %49 = vector.load %arg9[%c0_27, %c0_28] : memref<16x1xf32, #tpu.memory_space<vmem>>, vector<16x1xf32>
    tpu.vector_store %arg9[%c0_27, %c0_28], %48 {strides = array<i32>} : memref<16x1xf32, #tpu.memory_space<vmem>>, vector<16x1xf32>,
    %c0_29 = arith.constant 0 : index
    %c0_30 = arith.constant 0 : index
    %50 = vector.load %arg10[%c0_29, %c0_30] : memref<16x8xf32, #tpu.memory_space<vmem>>, vector<16x8xf32>
    %51 = vector.broadcast %40 : vector<16x1xf32> to vector<16x8xf32>
    %52 = arith.mulf %51, %50 : vector<16x8xf32>
    %53 = arith.truncf %43 : vector<16x16xf32> to vector<16x16xbf16>
    %cst_31 = arith.constant dense<0.000000e+00> : vector<16x8xf32>
    %54 = tpu.matmul %53, %32, %cst_31 {dimension_numbers = #tpu.dot_dimension_numbers<[1], [0], [0], [1], [0, 0, 1, 1], [], []>} : vector<16x16xbf16>, vector<16x8xbf16>, vector<16x8xf32> -> vector<16x8xf32>
    %55 = arith.addf %52, %54 : vector<16x8xf32>
    %c0_32 = arith.constant 0 : index
    %c0_33 = arith.constant 0 : index
    %56 = vector.load %arg10[%c0_32, %c0_33] : memref<16x8xf32, #tpu.memory_space<vmem>>, vector<16x8xf32>
    tpu.vector_store %arg10[%c0_32, %c0_33], %55 {strides = array<i32>} : memref<16x8xf32, #tpu.memory_space<vmem>>, vector<16x8xf32>,
    %c0_34 = arith.constant 0 : index
    %c0_35 = arith.constant 0 : index
    %57 = vector.load %arg8[%c0_34, %c0_35] : memref<16x1xf32, #tpu.memory_space<vmem>>, vector<16x1xf32>
    tpu.vector_store %arg8[%c0_34, %c0_35], %38 {strides = array<i32>} : memref<16x1xf32, #tpu.memory_space<vmem>>, vector<16x1xf32>,
    %c0_36 = arith.constant 0 : index
    %c0_37 = arith.constant 0 : index
    %58 = vector.load %arg10[%c0_36, %c0_37] : memref<16x8xf32, #tpu.memory_space<vmem>>, vector<16x8xf32>
    %c0_38 = arith.constant 0 : index
    %c0_39 = arith.constant 0 : index
    %59 = vector.load %arg9[%c0_38, %c0_39] : memref<16x1xf32, #tpu.memory_space<vmem>>, vector<16x1xf32>
    %60 = vector.broadcast %59 : vector<16x1xf32> to vector<16x8xf32>
    %61 = arith.divf %58, %60 : vector<16x8xf32>
    %c0_40 = arith.constant 0 : index
    %c0_41 = arith.constant 0 : index
    %c0_42 = arith.constant 0 : index
    %c0_43 = arith.constant 0 : index
    %62 = vector.load %arg7[%c0_40, %c0_41, %c0_42, %c0_43] : memref<1x1x16x8xf32, #tpu.memory_space<vmem>>, vector<1x1x16x8xf32>
    %63 = vector.shape_cast %62 : vector<1x1x16x8xf32> to vector<16x8xf32>
    %64 = vector.shape_cast %61 : vector<16x8xf32> to vector<1x1x16x8xf32>
    tpu.vector_store %arg7[%c0_40, %c0_41, %c0_42, %c0_43], %64 {strides = array<i32>} : memref<1x1x16x8xf32, #tpu.memory_space<vmem>>, vector<1x1x16x8xf32>,
    return
  }
  func.func @transform_0(%arg0: i32, %arg1: i32, %arg2: i32, %arg3: memref<4xf32, #tpu.memory_space<smem>>) -> (i32, i32, i32, i32) {
    %c0_i32 = arith.constant 0 : i32
    %c0_i32_0 = arith.constant 0 : i32
    return %arg0, %arg1, %arg2, %c0_i32 : i32, i32, i32, i32
  }
  func.func @transform_1(%arg0: i32, %arg1: i32, %arg2: i32, %arg3: memref<4xf32, #tpu.memory_space<smem>>) -> (i32, i32, i32, i32) {
    %c0_i32 = arith.constant 0 : i32
    %c0_i32_0 = arith.constant 0 : i32
    %c0_i32_1 = arith.constant 0 : i32
    return %arg0, %arg1, %c0_i32, %c0_i32_0 : i32, i32, i32, i32
  }
  func.func @transform_2(%arg0: i32, %arg1: i32, %arg2: i32, %arg3: memref<4xf32, #tpu.memory_space<smem>>) -> (i32, i32, i32, i32) {
    %c0_i32 = arith.constant 0 : i32
    %c0_i32_0 = arith.constant 0 : i32
    %c0_i32_1 = arith.constant 0 : i32
    return %arg0, %arg1, %c0_i32, %c0_i32_0 : i32, i32, i32, i32
  }
  func.func @transform_3(%arg0: i32, %arg1: i32, %arg2: i32, %arg3: memref<4xf32, #tpu.memory_space<smem>>) -> (i32, i32, i32, i32) {
    %c0_i32 = arith.constant 0 : i32
    %c0_i32_0 = arith.constant 0 : i32
    return %arg0, %arg1, %arg2, %c0_i32 : i32, i32, i32, i32
  }
}

module attributes {stable_mosaic.version = 11 : i64} {
  func.func @_linear_kernel(%arg0: i32, %arg1: i32, %arg2: i32, %arg3: memref<32x32xf32, #tpu.memory_space<vmem>>, %arg4: memref<32x32xf32, #tpu.memory_space<vmem>>, %arg5: memref<1x32xf32, #tpu.memory_space<vmem>>, %arg6: memref<32x32xf32, #tpu.memory_space<vmem>>, %arg7: memref<32x32xf32, #tpu.memory_space<vmem>>) attributes {dimension_semantics = [#tpu.dimension_semantics<parallel>, #tpu.dimension_semantics<parallel>, #tpu.dimension_semantics<arbitrary>], iteration_bounds = array<i64: 1, 1, 1>, scalar_prefetch = 0 : i64, scratch_operands = 1 : i64, tpu.core_type = #tpu.core_type<tc>, window_params = [{transform_indices = @transform_0, window_bounds = array<i64: 32, 32>}, {transform_indices = @transform_1, window_bounds = array<i64: 32, 32>}, {transform_indices = @transform_2, window_bounds = array<i64: 1, 32>}, {transform_indices = @transform_3, window_bounds = array<i64: 32, 32>}]} {
    %c0_i32 = arith.constant 0 : i32
    %0 = arith.cmpi eq, %arg2, %c0_i32 : i32
    %1 = arith.extui %0 : i1 to i32
    %c0_i32_0 = arith.constant 0 : i32
    %2 = arith.cmpi ne, %1, %c0_i32_0 : i32
    scf.if %2 {
      %cst_10 = arith.constant 0.000000e+00 : f32
      %14 = vector.broadcast %cst_10 : f32 to vector<32x32xf32>
      %c0_11 = arith.constant 0 : index
      %c0_12 = arith.constant 0 : index
      %15 = vector.load %arg7[%c0_11, %c0_12] : memref<32x32xf32, #tpu.memory_space<vmem>>, vector<32x32xf32>
      tpu.vector_store %arg7[%c0_11, %c0_12], %14 {strides = array<i32>} : memref<32x32xf32, #tpu.memory_space<vmem>>, vector<32x32xf32>,
    } else {
    }
    %c0 = arith.constant 0 : index
    %c0_1 = arith.constant 0 : index
    %3 = vector.load %arg3[%c0, %c0_1] : memref<32x32xf32, #tpu.memory_space<vmem>>, vector<32x32xf32>
    %c0_2 = arith.constant 0 : index
    %c0_3 = arith.constant 0 : index
    %4 = vector.load %arg4[%c0_2, %c0_3] : memref<32x32xf32, #tpu.memory_space<vmem>>, vector<32x32xf32>
    %5 = arith.truncf %3 : vector<32x32xf32> to vector<32x32xbf16>
    %6 = arith.truncf %4 : vector<32x32xf32> to vector<32x32xbf16>
    %c0_4 = arith.constant 0 : index
    %c0_5 = arith.constant 0 : index
    %7 = vector.load %arg7[%c0_4, %c0_5] : memref<32x32xf32, #tpu.memory_space<vmem>>, vector<32x32xf32>
    %cst = arith.constant dense<0.000000e+00> : vector<32x32xf32>
    %8 = tpu.matmul %5, %6, %cst {dimension_numbers = #tpu.dot_dimension_numbers<[1], [0], [0], [1], [0, 0, 1, 1], [], []>} : vector<32x32xbf16>, vector<32x32xbf16>, vector<32x32xf32> -> vector<32x32xf32>
    %9 = arith.addf %7, %8 : vector<32x32xf32>
    %c0_6 = arith.constant 0 : index
    %c0_7 = arith.constant 0 : index
    %10 = vector.load %arg7[%c0_6, %c0_7] : memref<32x32xf32, #tpu.memory_space<vmem>>, vector<32x32xf32>
    tpu.vector_store %arg7[%c0_6, %c0_7], %9 {strides = array<i32>} : memref<32x32xf32, #tpu.memory_space<vmem>>, vector<32x32xf32>,
    %c0_i32_8 = arith.constant 0 : i32
    %11 = arith.cmpi eq, %arg2, %c0_i32_8 : i32
    %12 = arith.extui %11 : i1 to i32
    %c0_i32_9 = arith.constant 0 : i32
    %13 = arith.cmpi ne, %12, %c0_i32_9 : i32
    scf.if %13 {
      %c0_10 = arith.constant 0 : index
      %c0_11 = arith.constant 0 : index
      %14 = vector.load %arg7[%c0_10, %c0_11] : memref<32x32xf32, #tpu.memory_space<vmem>>, vector<32x32xf32>
      %c0_12 = arith.constant 0 : index
      %c0_13 = arith.constant 0 : index
      %15 = vector.load %arg5[%c0_12, %c0_13] : memref<1x32xf32, #tpu.memory_space<vmem>>, vector<1x32xf32>
      %16 = vector.broadcast %15 : vector<1x32xf32> to vector<32x32xf32>
      %17 = arith.addf %14, %16 : vector<32x32xf32>
      %c0_14 = arith.constant 0 : index
      %c0_15 = arith.constant 0 : index
      %18 = vector.load %arg6[%c0_14, %c0_15] : memref<32x32xf32, #tpu.memory_space<vmem>>, vector<32x32xf32>
      tpu.vector_store %arg6[%c0_14, %c0_15], %17 {strides = array<i32>} : memref<32x32xf32, #tpu.memory_space<vmem>>, vector<32x32xf32>,
    } else {
    }
    return
  }
  func.func @transform_0(%arg0: i32, %arg1: i32, %arg2: i32) -> (i32, i32) {
    %c0_i32 = arith.constant 0 : i32
    return %arg0, %arg2 : i32, i32
  }
  func.func @transform_1(%arg0: i32, %arg1: i32, %arg2: i32) -> (i32, i32) {
    %c0_i32 = arith.constant 0 : i32
    return %arg2, %arg1 : i32, i32
  }
  func.func @transform_2(%arg0: i32, %arg1: i32, %arg2: i32) -> (i32, i32) {
    %c0_i32 = arith.constant 0 : i32
    %c0_i32_0 = arith.constant 0 : i32
    return %c0_i32, %arg1 : i32, i32
  }
  func.func @transform_3(%arg0: i32, %arg1: i32, %arg2: i32) -> (i32, i32) {
    %c0_i32 = arith.constant 0 : i32
    return %arg0, %arg1 : i32, i32
  }
}

</mosaic_0001>

<bundles_post_ra>
// kernel: flash_alibi_causal_self_attention.3
= control target key start
LH: loop header
LB: loop body
LE: loop exit
PB: predicated region body
PF: predicated region fallthrough
CT: control target
= control target key end

     0   :  { %vm19_vm0 = vcmask 785408   ;;  %v147_v3 = vmov 0.0   ;;  %vm40_vm1 = vcmask 261120   ;;  %s219_s1 = inlined_call_operand.vmem [shape: f32[32,96], index: 1, kind: input, shape index: {}]   ;;  %s220_s0 = inlined_call_operand.vmem [shape: f32[32,32], index: 0, kind: input, shape index: {}]   ;;  %s221_s2 = inlined_call_operand.vmem [shape: f32[1,96], index: 2, kind: input, shape index: {}]   ;;  %s222_s3 = inlined_call_operand.vmem [shape: f32[32,96], index: 3, kind: output, shape index: {}]  }
   0x1   :  { %v30_v0 = vld [vmem:[%s219_s1 + $0x10] sm:$0xff]  ;;  %v31_v1 = vld [vmem:[%s219_s1 + $0x18] sm:$0xff]  ;;  %v28_v2 = vld [vmem:[%s219_s1] sm:$0xff]  ;;  %22 = vst.msk [vmem:[#allocation2 + $0x10] sm:$0xff] %vm19_vm0, %v147_v3 }
   0x2   :  { %20 = vst.msk [vmem:[#allocation2] sm:$0xff] %vm19_vm0, %v147_v3  ;;  %21 = vst.msk [vmem:[#allocation2 + $0x8] sm:$0xff] %vm19_vm0, %v147_v3  ;;  %v35_v4 = vpack.c.bf16 %v31_v1, %v30_v0  ;;  %v29_v5 = vld [vmem:[%s219_s1 + $0x8] sm:$0xff]  ;;  %v24_v6 = vld [vmem:[%s220_s0] sm:$0xff] }
   0x3   :  { %23 = vst.msk [vmem:[#allocation2 + $0x18] sm:$0xff] %vm19_vm0, %v147_v3  ;;  %v25_v7 = vld [vmem:[%s220_s0 + $0x8] sm:$0xff]  ;;  %v34_v8 = vpack.c.bf16 %v29_v5, %v28_v2  ;;  %v26_v10 = vld [vmem:[%s220_s0 + $0x10] sm:$0xff]  ;;  %v27_v11 = vld [vmem:[%s220_s0 + $0x18] sm:$0xff] }
   0x4   :  { %v32_v9 = vpack.c.bf16 %v25_v7, %v24_v6  ;;  %138 = vmatprep.subr.bf16.mxu0 %v35_v4  ;;  %v33_v12 = vpack.c.bf16 %v27_v11, %v26_v10  ;;  %v133_v25 = vld [vmem:[%s221_s2] ss:$0 sm:$0xff] }
   0x5   :  { %139 = vmatpush3.bf16.msra.mxu0 %v35_v4 }
   0x6   :  { %142 = vmatprep.mubr.msk.bf16.mxu0 %vm40_vm1, %v32_v9  ;;  %140 = vmatprep.subr.bf16.mxu0 %v34_v8 }
   0x8   :  { %v38_v13 = vld [vmem:[#allocation2 + $0x10] sm:$0xff] }
   0x9   :  { %141 = vmatpush3.bf16.msra.mxu0 %v34_v8  ;;  %v36_v15 = vld [vmem:[#allocation2] sm:$0xff]  ;;  %v37_v21 = vld [vmem:[#allocation2 + $0x8] sm:$0xff] }
   0xa   :  { %v39_v18 = vld [vmem:[#allocation2 + $0x18] sm:$0xff] }
   0xc   :  { %143 = vmatmul.mubr.msk.bf16.vlgmr.msra.gmra.mxu0 %vm40_vm1, %v33_v12 }
  0xcc   :  { %v144_v14 = vpop.f32.mrf.mxu0 }
  0xcd   :  { %v98_v16 = vadd.f32 %v144_v14, %v38_v13 }
  0xce   :  { %v81_v17 = vpop.f32.mrf.mxu0 }
  0xcf   :  { %103 = vst.msk [vmem:[#allocation2 + $0x10] sm:$0xff] %vm19_vm0, %v98_v16  ;;  %v96_v19 = vadd.f32 %v81_v17, %v36_v15 }
  0xd0   :  { %v145_v20 = vpop.f32.mrf.mxu0 }
  0xd1   :  { %101 = vst.msk [vmem:[#allocation2] sm:$0xff] %vm19_vm0, %v96_v19  ;;  %v99_v22 = vadd.f32 %v145_v20, %v39_v18 }
  0xd2   :  { %v84_v23 = vpop.f32.mrf.mxu0 }
  0xd3   :  { %104 = vst.msk [vmem:[#allocation2 + $0x18] sm:$0xff] %vm19_vm0, %v99_v22  ;;  %v97_v24 = vadd.f32 %v84_v23, %v37_v21 }
  0xd5   :  { %102 = vst.msk [vmem:[#allocation2 + $0x8] sm:$0xff] %vm19_vm0, %v97_v24 }
  0xd6   :  { %v110_v26 = vld [vmem:[#allocation2 + $0x10] sm:$0xff] }
  0xd7   :  { %v121_v27 = vadd.f32 %v133_v25, %v110_v26 }
  0xd8   :  { %v108_v28 = vld [vmem:[#allocation2] sm:$0xff] }
  0xd9   :  { %125 = vst.msk [vmem:[%s222_s3 + $0x10] sm:$0xff] %vm19_vm0, %v121_v27  ;;  %v119_v29 = vadd.f32 %v133_v25, %v108_v28 }
  0xda   :  { %v111_v30 = vld [vmem:[#allocation2 + $0x18] sm:$0xff] }
  0xdb   :  { %123 = vst.msk [vmem:[%s222_s3] sm:$0xff] %vm19_vm0, %v119_v29  ;;  %v122_v31 = vadd.f32 %v133_v25, %v111_v30 }
  0xdc   :  { %v109_v32 = vld [vmem:[#allocation2 + $0x8] sm:$0xff] }
  0xdd   :  { %126 = vst.msk [vmem:[%s222_s3 + $0x18] sm:$0xff] %vm19_vm0, %v122_v31  ;;  %v120_v33 = vadd.f32 %v133_v25, %v109_v32 }
  0xdf   :  { %124 = vst.msk [vmem:[%s222_s3 + $0x8] sm:$0xff] %vm19_vm0, %v120_v33 }

// kernel: flash_alibi_causal_self_attention.5
= control target key start
LH: loop header
LB: loop body
LE: loop exit
PB: predicated region body
PF: predicated region fallthrough
CT: control target
= control target key end

     0   :  { %vm20_vm0 = vcmask 261120   ;;  %v184_v7 = vmov 0.0   ;;  %s252_s0 = inlined_call_operand.vmem [shape: f32[32,32], index: 0, kind: input, shape index: {}]   ;;  %s253_s1 = inlined_call_operand.vmem [shape: f32[32,32], index: 1, kind: input, shape index: {}]   ;;  %s254_s2 = inlined_call_operand.vmem [shape: f32[1,32], index: 2, kind: input, shape index: {}]   ;;  %s255_s3 = inlined_call_operand.hbm [shape: f32[32,32], index: 3, kind: output, shape index: {}]  }
   0x1   :  { %v31_v0 = vld [vmem:[%s253_s1 + $0x10] sm:$0xff]  ;;  %v32_v1 = vld [vmem:[%s253_s1 + $0x18] sm:$0xff]  ;;  %v29_v2 = vld [vmem:[%s253_s1] sm:$0xff]  ;;  %23 = vst.msk [vmem:[#allocation2 + $0x10] sm:$0xff] %vm20_vm0, %v184_v7 }
   0x2   :  { %v36_v3 = vpack.c.bf16 %v32_v1, %v31_v0  ;;  %v30_v4 = vld [vmem:[%s253_s1 + $0x8] sm:$0xff]  ;;  %v25_v5 = vld [vmem:[%s252_s0] sm:$0xff]  ;;  %21 = vst.msk [vmem:[#allocation2] sm:$0xff] %vm20_vm0, %v184_v7  ;;  %22 = vst.msk [vmem:[#allocation2 + $0x8] sm:$0xff] %vm20_vm0, %v184_v7 }
   0x3   :  { %v26_v6 = vld [vmem:[%s252_s0 + $0x8] sm:$0xff]  ;;  %24 = vst.msk [vmem:[#allocation2 + $0x18] sm:$0xff] %vm20_vm0, %v184_v7  ;;  %v35_v8 = vpack.c.bf16 %v30_v4, %v29_v2 }
   0x4   :  { %v33_v9 = vpack.c.bf16 %v26_v6, %v25_v5 }
   0x5   :  { %8 = vsyncpa [#allocation4], 0  ;;  %150 = vmatprep.subr.bf16.mxu0 %v36_v3  ;;  %v27_v10 = vld [vmem:[%s252_s0 + $0x10] sm:$0xff]  ;;  %v28_v11 = vld [vmem:[%s252_s0 + $0x18] sm:$0xff]  ;;  %s185_s28 = smov [#allocation3]  }
   0x6   :  { %151 = vmatpush3.bf16.msra.mxu0 %v36_v3  ;;  %154 = vmatprep.mubr.msk.bf16.mxu0 %vm20_vm0, %v33_v9  ;;  %v34_v12 = vpack.c.bf16 %v28_v11, %v27_v10  ;;  %v145_v25 = vld [vmem:[%s254_s2] ss:$0 sm:$0xff]  ;;  %s132_s29 = sshll.u32 %s185_s28, 4  ;;  %s133_s29 = int_to_ptr.vmem [resolvable:$true] %s132_s29 }
   0x7   :  { %152 = vmatprep.subr.bf16.mxu0 %v35_v8  ;;  %s162_s2 = scalar_lea.vmem %s133_s29, 512  ;;  %p167_p1 = scmp.lt.s32.totalorder %s133_s29, %s133_s29 }
   0x8   :  { %v39_v13 = vld [vmem:[#allocation2 + $0x10] sm:$0xff]  ;;  %p163_p0 = scmp.ne.s32.totalorder %s133_s29, %s162_s2  ;;  %p168_p2 = scmp.lt.s32.totalorder %s162_s2, %s162_s2 }
   0x9   :  { %v37_v15 = vld [vmem:[#allocation2] sm:$0xff]  ;;  %v38_v21 = vld [vmem:[#allocation2 + $0x8] sm:$0xff] }
   0xa   :  { %153 = vmatpush3.bf16.msra.mxu0 %v35_v8  ;;  %v40_v18 = vld [vmem:[#allocation2 + $0x18] sm:$0xff]  ;;  %p169_p3 = por %p168_p2, %p167_p1 }
   0xc   :  { %p170_p4 = pnand %p169_p3, %p163_p0 }
   0xd   :  { %155 = vmatmul.mubr.msk.bf16.vlgmr.msra.gmra.mxu0 %vm20_vm0, %v34_v12 }
  0xcd   :  { %v156_v14 = vpop.f32.mrf.mxu0 }
  0xce   :  { %v99_v16 = vadd.f32 %v156_v14, %v39_v13 }
  0xcf   :  { %v82_v17 = vpop.f32.mrf.mxu0 }
  0xd0   :  { %103 = vst.msk [vmem:[#allocation2 + $0x10] sm:$0xff] %vm20_vm0, %v99_v16  ;;  %v97_v19 = vadd.f32 %v82_v17, %v37_v15 }
  0xd1   :  { %v157_v20 = vpop.f32.mrf.mxu0 }
  0xd2   :  { %101 = vst.msk [vmem:[#allocation2] sm:$0xff] %vm20_vm0, %v97_v19  ;;  %v100_v22 = vadd.f32 %v157_v20, %v40_v18 }
  0xd3   :  { %v85_v23 = vpop.f32.mrf.mxu0 }
  0xd4   :  { %104 = vst.msk [vmem:[#allocation2 + $0x18] sm:$0xff] %vm20_vm0, %v100_v22  ;;  %v98_v24 = vadd.f32 %v85_v23, %v38_v21 }
  0xd6   :  { %102 = vst.msk [vmem:[#allocation2 + $0x8] sm:$0xff] %vm20_vm0, %v98_v24 }
  0xd7   :  { %v110_v26 = vld [vmem:[#allocation2 + $0x10] sm:$0xff] }
  0xd8   :  { %v121_v27 = vadd.f32 %v145_v25, %v110_v26 }
  0xd9   :  { %v108_v28 = vld [vmem:[#allocation2] sm:$0xff] }
  0xda   :  { %v119_v29 = vadd.f32 %v145_v25, %v108_v28  ;;  %125 = vst.msk [vmem:[#allocation3 + $0x10] sm:$0xff] %vm20_vm0, %v121_v27 }
  0xdb   :  { %v111_v30 = vld [vmem:[#allocation2 + $0x18] sm:$0xff] }
  0xdc   :  { %v122_v31 = vadd.f32 %v145_v25, %v111_v30  ;;  %123 = vst.msk [vmem:[#allocation3] sm:$0xff] %vm20_vm0, %v119_v29 }
  0xdd   :  { %v109_v32 = vld [vmem:[#allocation2 + $0x8] sm:$0xff] }
  0xde   :  { %v120_v33 = vadd.f32 %v145_v25, %v109_v32  ;;  %126 = vst.msk [vmem:[#allocation3 + $0x18] sm:$0xff] %vm20_vm0, %v122_v31 }
  0xe0   :  { %124 = vst.msk [vmem:[#allocation3 + $0x8] sm:$0xff] %vm20_vm0, %v120_v33 }
  0xe1   :  { %173 = shalt.err (!%p170_p4)
}
  0xe2   :  { %s186_s30 = smov 128   ;;  %s187_s4 = smov 8  }
  0xe3   :  { %138 = dma.vmem_to_hbm [thread:$0]  %s133_s29, 512, %s255_s3, [#allocation4], %s186_s30, %s186_s30, %s187_s4  }
  0xe4   :  { %182 = dma.done.wait [#allocation4], 512  }
  0xe5   :  { %183 = vsyncadd [#allocation4], 4294966784 }
  0xe6   :  { %142 = vsyncpa [#allocation4], 1 }

// kernel: flash_alibi_causal_self_attention.4
= control target key start
LH: loop header
LB: loop body
LE: loop exit
PB: predicated region body
PF: predicated region fallthrough
CT: control target
= control target key end

     0   :  { %s1160_s0 = inlined_call_operand.vmem [shape: f32[4], index: 0, kind: input, shape index: {}]   ;;  %s1161_s1 = inlined_call_operand.vmem [shape: f32[2,4,16,8], index: 1, kind: input, shape index: {}]   ;;  %s1162_s2 = inlined_call_operand.vmem [shape: f32[2,4,16,8], index: 2, kind: input, shape index: {}]   ;;  %s1163_s3 = inlined_call_operand.vmem [shape: f32[2,4,16,8], index: 3, kind: input, shape index: {}]   ;;  %s1164_s4 = inlined_call_operand.vmem [shape: f32[2,4,16,8], index: 4, kind: output, shape index: {}]  }
   0x1   :  { %s9_s17 = sshll.u32 %s1160_s0, 4  ;;  %s10_s17 = int_to_ptr.vmem [resolvable:$true] %s9_s17 }
   0x2   :  { %s984_s18 = scalar_lea.vmem %s10_s17, 16  ;;  %p989_p1 = scmp.lt.s32.totalorder %s10_s17, %s10_s17 }
   0x3   :  { %p985_p0 = scmp.ne.s32.totalorder %s10_s17, %s984_s18  ;;  %p990_p2 = scmp.lt.s32.totalorder %s984_s18, %s984_s18 }
   0x5   :  { %p991_p3 = por %p990_p2, %p989_p1 }
   0x7   :  { %p992_p4 = pnand %p991_p3, %p985_p0 }
   0x9   :  { %995 = shalt.err (!%p992_p4)  }
   0xa   :  { %s1038_s19 = smov [#allocation6]  }
   0xb   :  { %12 = dma.vmem_to_smem %s10_s17, 16, %s1038_s19, [#allocation5] }
   0xc   :  { %1016 = dma.done.wait [#allocation5], 16 }
   0xd   :  { %1017 = vsyncadd [#allocation5], 4294967280 }
   0xe   :  { %14 = sfence }
   0xf   :  { %s1071_s20 = smov 0   ;;  %s1073_s21 = smov 0  }
  0x10   :  { %s1075_s22 = smov 0   ;;  %s1077_s0 = smov 0  }
  0x11   :  { %s1079_s23 = smov 0  }
  0x12 LB: > { %s35_s24 = sadd.s32 1, %s1028_s22  ;;  %s39_s25 = sadd.s32 1, %s1032_s0  ;;  %s1036_s23 = sphi %s1079_s23, %s20_s23   ;;  %s1032_s0 = sphi %s1077_s0, %s1168_s0   ;;  %s1028_s22 = sphi %s1075_s22, %s1167_s22   ;;  %s1024_s21 = sphi %s1073_s21, %s1166_s21   ;;  %s1020_s20 = sphi %s1071_s20, %s1165_s20  }
  0x13   : > { %p37_p5 = scmp.ge.s32.totalorder %s35_s24, 4  ;;  %p888_p6 = scmp.ge.s32.totalorder %s1036_s23, 1 }
  0x14   : > { %p212_p7 = scmp.lt.s32.totalorder %s1036_s23, 9 }
  0x15   : > { %s1170_s24 = smov (%p37_p5, %s35_s24), 0  ;;  %s1172_s25 = smov (!%p37_p5, %s39_s25), %s1032_s0 }
  0x16   : > { %p213_p8 = pnand %p888_p6, %p212_p7  ;;  %p41_p9 = scmp.ge.s32.totalorder %s1172_s25, 2 }
  0x17   : > { %p271_p10 = scmp.lt.s32.totalorder (!%p213_p8), %s1024_s21, 1  ;;  %p273_p11 = scmp.lt.s32.totalorder (!%p213_p8), %s1020_s20, 3 }
  0x18   : > { %s1174_s25 = smov (%p41_p9, %s1172_s25), 0  ;;  %216 = sbr.rel (%p213_p8) target bundleno = 821 (0x335), region = 32 }
  0x19   : > { %s328_s11 = sld [smem:[#allocation6 + %s1020_s20]] (!%p213_p8) }
  0x1d   : > { %vm322_vm0 = vcmask 64512   ;;  %v1039_v0 = vmov 0.0   ;;  %vm1040_vm1 = vmmov 0   ;;  %s1176_s21 = smov (!%p271_p10, %s1024_s21), 1  ;;  %vm317_vm2 = vcmask 7168  }
  0x1e   : > { %913 = vmatprep.subr.bf16.mxu0 %v1039_v0  ;;  %323 = vst.msk [vmem:[#allocation4] sm:$0xff] %vm322_vm0, %v1039_v0  ;;  %324 = vst.msk [vmem:[#allocation4 + $0x8] sm:$0xff] %vm322_vm0, %v1039_v0  ;;  %915 = vmatprep.mubr.msk.bf16.mxu0 %vm1040_vm1, %v1039_v0  ;;  %s274_s26 = scalar_select %p273_p11, %s1020_s20, 3  ;;  %v1041_v8 = vmov -1e+30   ;;  %v329_v9 = vlaneseq  ;;  %vm584_vm5 = vcmask 130048  }
  0x1f   : > { %919 = vmatprep.subr.bf16.mxu1 %v1039_v0  ;;  %921 = vmatprep.mubr.msk.bf16.mxu1 %vm1040_vm1, %v1039_v0  ;;  %s890_s27 = sshll.u32 %s1176_s21, 3  ;;  %318 = vst.msk [vmem:[#allocation2] sm:$0xff] %vm317_vm2, %v1041_v8  ;;  %319 = vst.msk [vmem:[#allocation2 + $0x8] sm:$0xff] %vm317_vm2, %v1041_v8  ;;  %v338_v16 = vstv %s328_s11  ;;  %v1042_v30 = vmov 0  }
  0x20   : > { %s889_s28 = sshll.u32 %s274_s26, 1  ;;  %320 = vst.msk [vmem:[#allocation3] sm:$0xff] %vm317_vm2, %v1039_v0  ;;  %321 = vst.msk [vmem:[#allocation3 + $0x8] sm:$0xff] %vm317_vm2, %v1039_v0  ;;  %v330_v10 = vand.u32 127, %v329_v9  ;;  %v332_v11 = vshrl.u32 %v329_v9, 7  ;;  %970 = vset.pattern.permute.xlu1 %v1042_v30  ;;  %971 = vset.pattern.permute.xlu0 %v1042_v30 }
  0x21   : > { %s280_s29 = sadd.s32 %s890_s27, %s889_s28 }
  0x22   : > { %s1107_s30 = sshll.u32 %s280_s29, 3  ;;  %v334_v12 = vsub.s32 %v330_v10, %v332_v11  ;;  %v333_v13 = vadd.s32 8, %v332_v11 }
  0x23   : > { %s292_s7 = scalar_lea.vmem %s1162_s2, %s1107_s30  ;;  %s282_s10 = scalar_lea.vmem %s1161_s1, %s1107_s30 }
  0x24   : > { %v528_v1 = vld [vmem:[%s292_s7] sm:$0xff]  ;;  %v529_v2 = vld [vmem:[%s292_s7 + $0x8] sm:$0xff]  ;;  %v336_v14 = vcvt.s32.f32 %v334_v12  ;;  %v335_v15 = vsub.s32 %v330_v10, %v333_v13  ;;  %vm341_vm3 = vcmp.le.s32.totalorder %v334_v12, 0  ;;  %s301_s14 = scalar_lea.vmem %s1163_s3, %s1107_s30  ;;  %s314_s17 = scalar_lea.vmem %s1164_s4, %s1107_s30 }
  0x25   : > { %v530_v3 = vpack.c.bf16 %v529_v2, %v528_v1  ;;  %v325_v5 = vld [vmem:[%s282_s10] sm:$0xff]  ;;  %v326_v6 = vld [vmem:[%s282_s10 + $0x8] sm:$0xff] }
  0x26   : > { %v327_v7 = vpack.c.bf16 %v326_v6, %v325_v5  ;;  %v339_v17 = vmul.f32 %v338_v16, %v336_v14  ;;  %v337_v18 = vcvt.s32.f32 %v335_v15  ;;  %vm342_vm4 = vcmp.le.s32.totalorder %v335_v15, 0  ;;  %v582_v31 = vld [vmem:[#allocation2] sm:$0xff]  ;;  %v583_v34 = vld [vmem:[#allocation2 + $0x8] sm:$0xff] }
  0x27   : > { %v539_v4 = vsel %vm322_vm0, %v530_v3, 0  ;;  %v532_v39 = vld [vmem:[%s301_s14] sm:$0xff]  ;;  %v533_v40 = vld [vmem:[%s301_s14 + $0x8] sm:$0xff]  ;;  %v615_v56 = vld [vmem:[#allocation3] sm:$0xff] }
  0x28   : > { %914 = vmatpush3.bf16.xpose.msra.mxu0 %v539_v4  ;;  %v343_v19 = vsel %vm341_vm3, %v339_v17, -1e+30  ;;  %v340_v20 = vmul.f32 %v338_v16, %v337_v18  ;;  %v534_v41 = vpack.c.bf16 %v533_v40, %v532_v39  ;;  %v616_v60 = vld [vmem:[#allocation3 + $0x8] sm:$0xff]  ;;  %v629_v8 = vld [vmem:[#allocation4] sm:$0xff]  ;;  %v630_v12 = vld [vmem:[#allocation4 + $0x8] sm:$0xff] }
  0x2a   : > { %v344_v24 = vsel %vm342_vm4, %v340_v20, -1e+30  ;;  %920 = vmatpush3.bf16.msra.mxu1 %v534_v41 }
  0x2f   : > { %916 = vmatmul.mubr.msk.bf16.vlgmr.msra.gmra.mxu0 %vm322_vm0, %v327_v7 }
  0xef   : > { %v575_v21 = vpop.f32.mrf.mxu0 }
  0xf0   : > { %v576_v22 = vadd.f32 %v575_v21, %v343_v19 }
  0xf1   : > { %v917_v23 = vpop.f32.mrf.mxu0 }
  0xf2   : > { %v585_v25 = vsel %vm584_vm5, %v576_v22, -inf }
  0xf3   : > { %586 = vmax.xlane.f32.xlu0 %v585_v25  ;;  %v578_v26 = vpop.f32.mrf.mxu0 }
  0xf4   : > { %v579_v27 = vadd.f32 %v578_v26, %v344_v24 }
  0xf5   : > { %v918_v28 = vpop.f32.mrf.mxu0 }
  0xf6   : > { %v588_v29 = vsel %vm584_vm5, %v579_v27, -inf }
  0xf7   : > { %589 = vmax.xlane.f32.xlu0 %v588_v29 }
 0x17c   : > { %v587_v32 = vpop.xlane.xlu0 %586 }
 0x17d   : > { %v591_v33 = vmax.f32 %v582_v31, %v587_v32 }
 0x17f   : > { %v593_v35 = vsub.f32 %v582_v31, %v591_v33  ;;  %692 = vst.msk [vmem:[#allocation2] sm:$0xff] %vm317_vm2, %v591_v33  ;;  %601 = vperm.xlu1 %970, %v591_v33  }
 0x180   : > { %v590_v36 = vpop.xlane.xlu0 %589 }
 0x181   : > { %v592_v37 = vmax.f32 %v583_v34, %v590_v36  ;;  %v595_v53 = vmul.f32 1.442695, %v593_v35 }
 0x183   : > { %v594_v38 = vsub.f32 %v583_v34, %v592_v37  ;;  %693 = vst.msk [vmem:[#allocation2 + $0x8] sm:$0xff] %vm317_vm2, %v592_v37  ;;  %606 = vperm.xlu1 %970, %v592_v37  }
 0x185   : > { %v597_v54 = vmul.f32 1.442695, %v594_v38 }
 0x1fa   : > { %v602_v42 = vpop.permute.xlu1 %601 }
 0x1fb   : > { %v609_v43 = vsub.f32 %v576_v22, %v602_v42 }
 0x1fd   : > { %v611_v44 = vmul.f32 1.442695, %v609_v43 }
 0x1fe   : > { %v607_v45 = vpop.permute.xlu1 %606 }
 0x1ff   : > { %972 = vpow2.f32 %v611_v44  ;;  %v610_v46 = vsub.f32 %v579_v27, %v607_v45 }
 0x201   : > { %v613_v47 = vmul.f32 1.442695, %v610_v46 }
 0x203   : > { %974 = vpow2.f32 %v613_v47 }
 0x204   : > { %976 = vpow2.f32 %v595_v53 }
 0x205   : > { %978 = vpow2.f32 %v597_v54 }
 0x20c   : > { %v973_v48 = vpop.eup %972 }
 0x20d   : > { %v619_v49 = vsel %vm584_vm5, %v973_v48, 0.0 }
 0x20e   : > { %620 = vadd.xlane.f32.xlu0 %v619_v49 }
 0x210   : > { %v975_v50 = vpop.eup %974 }
 0x211   : > { %v622_v51 = vsel %vm584_vm5, %v975_v50, 0.0  ;;  %v643_v52 = vpack.c.bf16 %v975_v50, %v973_v48  ;;  %v977_v55 = vpop.eup %976 }
 0x212   : > { %623 = vadd.xlane.f32.xlu1 %v622_v51  ;;  %v617_v57 = vmul.f32 %v977_v55, %v615_v56  ;;  %v979_v58 = vpop.eup %978 }
 0x213   : > { %922 = vmatmul.mubr.msk.bf16.vlgmr.msra.gmra.mxu1 %vm584_vm5, %v643_v52  ;;  %v618_v62 = vmul.f32 %v979_v58, %v616_v60 }
 0x297   : > { %v621_v59 = vpop.xlane.xlu0 %620 }
 0x298   : > { %v625_v61 = vadd.f32 %v621_v59, %v617_v57 }
 0x29a   : > { %627 = vst.msk [vmem:[#allocation3] sm:$0xff] %vm317_vm2, %v625_v61 }
 0x29b   : > { %v624_v63 = vpop.xlane.xlu1 %623 }
 0x29c   : > { %v626_v0 = vadd.f32 %v624_v63, %v618_v62 }
 0x29e   : > { %628 = vst.msk [vmem:[#allocation3 + $0x8] sm:$0xff] %vm317_vm2, %v626_v0 }
 0x2a1   : > { %v696_v1 = vld [vmem:[#allocation3] sm:$0xff] }
 0x2a2   : > { %700 = vperm.xlu0 %971, %v696_v1  }
 0x2a5   : > { %v697_v2 = vld [vmem:[#allocation3 + $0x8] sm:$0xff] }
 0x2a6   : > { %705 = vperm.xlu1 %970, %v697_v2   ;;  %633 = vperm.xlu0 %971, %v977_v55  }
 0x2aa   : > { %638 = vperm.xlu0 %971, %v979_v58  }
 0x2d3   : > { %v681_v3 = vpop.f32.mrf.mxu1 }
 0x2d5   : > { %v923_v4 = vpop.f32.mrf.mxu1 }
 0x2d7   : > { %v684_v5 = vpop.f32.mrf.mxu1 }
 0x2d9   : > { %v924_v6 = vpop.f32.mrf.mxu1 }
 0x31d   : > { %v701_v7 = vpop.permute.xlu0 %700 }
 0x31e   : > { %980 = vrcp.f32 %v701_v7 }
 0x321   : > { %v706_v9 = vpop.permute.xlu1 %705  ;;  %v634_v10 = vpop.permute.xlu0 %633 }
 0x322   : > { %v641_v11 = vmul.f32 %v634_v10, %v629_v8  ;;  %982 = vrcp.f32 %v706_v9 }
 0x324   : > { %v688_v13 = vadd.f32 %v681_v3, %v641_v11 }
 0x325   : > { %v639_v14 = vpop.permute.xlu0 %638 }
 0x326   : > { %690 = vst.msk [vmem:[#allocation4] sm:$0xff] %vm322_vm0, %v688_v13  ;;  %v642_v15 = vmul.f32 %v639_v14, %v630_v12 }
 0x328   : > { %v689_v16 = vadd.f32 %v684_v5, %v642_v15 }
 0x32a   : > { %691 = vst.msk [vmem:[#allocation4 + $0x8] sm:$0xff] %vm322_vm0, %v689_v16 }
 0x32b   : > { %v981_v17 = vpop.eup %980 }
 0x32d   : > { %v694_v18 = vld [vmem:[#allocation4] sm:$0xff] }
 0x32e   : > { %v709_v19 = vmul.f32 %v981_v17, %v694_v18 }
 0x32f   : > { %v983_v20 = vpop.eup %982 }
 0x330   : > { %712 = vst.msk [vmem:[%s314_s17] sm:$0xff] %vm322_vm0, %v709_v19 }
 0x331   : > { %v695_v21 = vld [vmem:[#allocation4 + $0x8] sm:$0xff] }
 0x332   : > { %v711_v22 = vmul.f32 %v983_v20, %v695_v21 }
 0x334   : > { %713 = vst.msk [vmem:[%s314_s17 + $0x8] sm:$0xff] %vm322_vm0, %v711_v22 }
 0x335 PF: > { %s20_s23 = sadd.s32 1, %s1036_s23   ;;  %s1165_s20 = smov %s1028_s22 }
 0x336   : > { %p17_p12 = scmp.ge.s32.totalorder %s20_s23, 10   ;;  %s1166_s21 = smov %s1032_s0 }
 0x337   : > { %s1167_s22 = smov %s1170_s24  ;;  %s1168_s0 = smov %s1174_s25 }
 0x338   :  { %19 = sbr.rel (!%p17_p12) target bundleno = 18 (0x12), region = 90 }

</bundles_post_ra>
